<compile_context>
chip_gen: v7x
topology: tpu7x:2x2x1
jax: 0.10.0
libtpu: 0.0.40
codegen_flags: <defaults>
</compile_context>

<pallas_src>
import functools

import jax
import jax.numpy as jnp
import numpy as np
from jax.experimental import pallas as pl
from jax.experimental.pallas import tpu as pltpu

_SUBLANE = 8
_WIDTH_CANDIDATES = (8192, 4096, 2048, 1024, 512)
_FALLBACK_WIDTH = 1024


def _align_up(v, m):
    return -(-v // m) * m


def _align_down(v, m):
    return (v // m) * m


def _sublane_multiple(dtype):
    # f32 -> 8, bf16 -> 16, int8/fp8 -> 32 (packed layouts need more rows per tile).
    return max(_SUBLANE, 32 // max(1, jnp.dtype(dtype).itemsize))


@functools.lru_cache(maxsize=1)
def _hw_config():
    """Generation-aware block / VMEM configuration."""
    vmem_bytes = 0
    try:
        info = pltpu.get_tpu_info()
        vmem_bytes = int(getattr(info, "vmem_capacity_bytes", 0) or 0)
    except Exception:
        vmem_bytes = 0
    if vmem_bytes >= 100 * 1024 * 1024:
        # v5e / v6e: 128 MiB physical VMEM -> big blocks, generous scoped limit.
        return {"vmem_limit_bytes": 64 * 1024 * 1024,
                "target_block_bytes": 8 * 1024 * 1024,
                "single_block_bytes": 2 * 1024 * 1024,
                "min_blocks": 1}
    if vmem_bytes > 0:
        # v7x: 64 MiB VMEM, 2 TensorCores, ~2.3x HBM BW -> smaller blocks, deeper grids.
        return {"vmem_limit_bytes": 40 * 1024 * 1024,
                "target_block_bytes": 4 * 1024 * 1024,
                "single_block_bytes": 512 * 1024,
                "min_blocks": 4}
    # Unknown backend: conservative defaults safe on every generation.
    return {"vmem_limit_bytes": 32 * 1024 * 1024,
            "target_block_bytes": 4 * 1024 * 1024,
            "single_block_bytes": 1 * 1024 * 1024,
            "min_blocks": 1}


# ----------------------------------------------------------------------------
# Tiling plan: flatten -> (rows, width) lane-dense slab, tiled as (tile_rows, width).
# Returns (rows, width, tile_rows) with rows % tile_rows == 0 and rows*width >= n.
# ----------------------------------------------------------------------------
def _plan(n, dtype, cfg):
    itemsize = jnp.dtype(dtype).itemsize
    sub = _sublane_multiple(dtype)
    single_elems = max(1, cfg["single_block_bytes"] // itemsize)
    target_elems = max(1, cfg["target_block_bytes"] // itemsize)
    min_blocks = max(1, cfg["min_blocks"])

    # Width: prefer the largest lane-dense width that divides n exactly (zero-copy
    # reshape); otherwise a fixed wide layout (padding handled by the caller).
    width = 0
    for w in _WIDTH_CANDIDATES:
        if n % w == 0:
            width = w
            break
    exact_width = width != 0
    if not exact_width:
        width = _FALLBACK_WIDTH

    rows_needed = pl.cdiv(n, width)

    # Small tensor: one block covering the whole array (a full-array block is exempt
    # from the (8,128) divisibility rule, so exact-width cases stay zero-copy).
    if n <= single_elems:
        rows = rows_needed if exact_width else _align_up(rows_needed, sub)
        return rows, width, rows

    # Multi-block path: target ~cfg["target_block_bytes"] per block.
    target_rows = max(sub, _align_down(target_elems // width, sub))

    if exact_width:
        # Try to keep the reshape zero-copy: a divisor of rows_needed that is a multiple
        # of `sub`, within [target_rows/2, target_rows], and gives >= min_blocks blocks.
        lo = max(sub, _align_down(max(sub, target_rows // 2), sub))
        t = _align_down(target_rows, sub)
        while t >= lo:
            if rows_needed % t == 0 and (rows_needed // t) >= min_blocks:
                return rows_needed, width, t
            t -= sub

    # Padded, evenly split blocks near the target size (overshoot <= num_blocks*sub rows).
    num_blocks = max(min_blocks, pl.cdiv(rows_needed, target_rows))
    num_blocks = max(1, min(num_blocks, rows_needed // sub))
    tile_rows = max(sub, _align_up(pl.cdiv(rows_needed, num_blocks), sub))
    rows = num_blocks * tile_rows
    return rows, width, tile_rows


def _pad_reshape(x, rows, width):
    """Flatten to (rows, width); pad only when the layout is ragged (rare)."""
    flat = x.reshape(-1)
    n = flat.shape[0]
    padded = rows * width
    if padded != n:
        # TODO(synk): fully ragged large tensors still pay one XLA pad + slice pass;
        # in-kernel tail handling via manual DMA / masked store would remove it.
        flat = jnp.pad(flat, (0, padded - n))
    return flat.reshape(rows, width)


# ----------------------------------------------------------------------------
# Warmup statistics: single fused pass producing sum(x) and sum(x*x).
# Full-block VMEM vector accumulators (VALU adds per step), one cross-lane
# reduction at the last grid step.  Zero padding contributes 0 to both moments.
# ----------------------------------------------------------------------------
def _stats_kernel(x_ref, sum_ref, sumsq_ref, acc_s_ref, acc_q_ref):
    @pl.when(pl.program_id(0) == 0)
    def _():
        acc_s_ref[...] = jnp.zeros_like(acc_s_ref)
        acc_q_ref[...] = jnp.zeros_like(acc_q_ref)

    xv = x_ref[...].astype(jnp.float32)
    acc_s_ref[...] += xv
    acc_q_ref[...] += xv * xv

    @pl.when(pl.program_id(0) == pl.num_programs(0) - 1)
    def _():
        sum_ref[...] = jnp.sum(acc_s_ref[...])[None, None]
        sumsq_ref[...] = jnp.sum(acc_q_ref[...])[None, None]


@functools.partial(jax.jit, static_argnames=("rows", "width", "tile_rows", "vmem_limit"))
def _tqt_threshold_3sd(x, *, rows, width, tile_rows, vmem_limit):
    """log2(|mean(x + 1e-6)| + 3*std(x)); Table 2 of https://arxiv.org/pdf/1903.08066.pdf."""
    n = x.size
    x2d = _pad_reshape(x, rows, width)
    s, ss = pl.pallas_call(
        _stats_kernel,
        out_shape=(jax.ShapeDtypeStruct((1, 1), jnp.float32),
                   jax.ShapeDtypeStruct((1, 1), jnp.float32)),
        grid=(rows // tile_rows,),
        in_specs=[pl.BlockSpec((tile_rows, width), lambda i: (i, 0))],
        out_specs=(pl.BlockSpec((1, 1), lambda i: (0, 0)),
                   pl.BlockSpec((1, 1), lambda i: (0, 0))),
        scratch_shapes=[pltpu.VMEM((tile_rows, width), jnp.float32),
                        pltpu.VMEM((tile_rows, width), jnp.float32)],
        compiler_params=pltpu.CompilerParams(
            dimension_semantics=("arbitrary",),      # reduction: scratch/outputs resident
            vmem_limit_bytes=vmem_limit),
    )(x2d)
    mean = s[0, 0] / n
    var = jnp.maximum(ss[0, 0] / n - mean * mean, 0.0)   # ddof=0, matches np.std
    threshold = jnp.abs(mean + 1e-6) + 3.0 * jnp.sqrt(var)
    return jnp.log2(threshold).reshape(1).astype(jnp.float32)


# ----------------------------------------------------------------------------
# TQT fake-quantize elementwise hot path (HBM-bandwidth bound).
# ----------------------------------------------------------------------------
def _tqt_quantize_kernel(scale_ref, x_ref, o_ref, *, method, quant_min, quant_max):
    scale = scale_ref[0]
    inv_scale = scale_ref[1]             # exact: scale is a power of two
    v = x_ref[...].astype(jnp.float32) * inv_scale
    if method == 3:
        # std_round: ties away from zero (weights).
        # TODO(synk): on v7x with bf16 I/O this ~6-op sequence could be trimmed with a
        # sign-bit copysign+trunc trick if the kernel ever flips VALU-bound.
        r = jnp.where(v >= 0, jnp.floor(v + 0.5), jnp.ceil(v - 0.5))
    else:
        # half_up: ties toward +inf (activations). Intentionally NOT round-half-even.
        r = jnp.floor(v + 0.5)
    q = jnp.clip(r, quant_min, quant_max)
    o_ref[...] = (q * scale).astype(o_ref.dtype)


@functools.partial(jax.jit,
                   static_argnames=("method", "domain", "rows", "width", "tile_rows",
                                    "vmem_limit"))
def _tqt_quantize(x, log_threshold, *, method, domain, rows, width, tile_rows, vmem_limit):
    ceil_lt = jnp.ceil(log_threshold[0].astype(jnp.float32))
    scale = jnp.exp2(ceil_lt) / domain           # power of two -> exact
    inv_scale = jnp.exp2(-ceil_lt) * domain      # exact reciprocal of scale
    scale_smem = jnp.stack([scale, inv_scale]).astype(jnp.float32)

    x2d = _pad_reshape(x, rows, width)
    kern = functools.partial(_tqt_quantize_kernel, method=int(method),
                             quant_min=float(-domain), quant_max=float(domain - 1))
    out2d = pl.pallas_call(
        kern,
        out_shape=jax.ShapeDtypeStruct((rows, width), x.dtype),
        grid=(rows // tile_rows,),
        in_specs=[pl.BlockSpec(memory_space=pltpu.MemorySpace.SMEM),
                  pl.BlockSpec((tile_rows, width), lambda i: (i, 0))],
        out_specs=pl.BlockSpec((tile_rows, width), lambda i: (i, 0)),
        compiler_params=pltpu.CompilerParams(
            # TODO(synk): verify with xprof that "parallel" shards the 1-D grid across
            # both v7x TensorCores; switch to pltpu.CORE_PARALLEL if it does not.
            dimension_semantics=("parallel",),
            vmem_limit_bytes=vmem_limit),
    )(scale_smem, x2d)

    n = x.size
    flat = out2d.reshape(-1)
    if flat.shape[0] != n:
        flat = flat[:n]
    return flat.reshape(x.shape)


# ----------------------------------------------------------------------------
# Python-side module mirroring TQTQuantizer's state machine.
# ----------------------------------------------------------------------------
class TQTQuantizerPallas:
    def __init__(self, bitwidth, tensor_type, method=None, plan_overrides=None):
        if tensor_type not in ("weight", "act"):
            raise ValueError("'tensor_type' must be one of ['weight', 'act']")
        self.bitwidth = int(bitwidth)
        self.tensor_type = tensor_type
        self.method = method if method is not None else (3 if tensor_type == "weight" else 2)
        self.domain = float(2 ** (self.bitwidth - 1))
        # nn.Parameter(torch.tensor([0.0])) -> deterministic init
        self.log_threshold = jnp.zeros((1,), jnp.float32)
        self.quant_enabled = True
        self.warmup_enabled = True
        self._cfg = dict(_hw_config())
        if plan_overrides:
            self._cfg.update(plan_overrides)

    # --- TorchQuantizer-style quant-info exchange ---------------------------------
    def import_quant_info(self, qinfo):
        bitwidth, fp = qinfo
        self.bitwidth = int(bitwidth)
        self.domain = float(2 ** (self.bitwidth - 1))
        self.log_threshold = jnp.asarray([self.bitwidth - 1 - fp], jnp.float32)
        self.warmup_enabled = False

    def export_quant_info(self):
        ceil_log2t = float(jnp.ceil(self.log_threshold[0]))
        return [[self.bitwidth, int(self.bitwidth - 1 - ceil_log2t)]]

    def enable_quant(self, enabled=True):
        self.quant_enabled = bool(enabled)
        return self

    def disable_quant(self):
        return self.enable_quant(False)

    def enable_warmup(self, enabled=True):
        self.warmup_enabled = bool(enabled)
        return self

    def disable_warmup(self):
        return self.enable_warmup(False)

    # --- forward -------------------------------------------------------------------
    def __call__(self, x):
        if not self.quant_enabled:
            return x
        rows, width, tile_rows = _plan(int(x.size), x.dtype, self._cfg)
        vmem_limit = int(self._cfg["vmem_limit_bytes"])
        if self.warmup_enabled:
            if self.tensor_type != "weight":
                # TODO(synk): activation warmup uses the KL-J histogram search
                # (np.histogram / np.interp on host) which has no clean Pallas
                # equivalent; import thresholds via import_quant_info instead.
                raise NotImplementedError("act-mode warmup (KL-J init) not implemented")
            self.log_threshold = _tqt_threshold_3sd(
                x, rows=rows, width=width, tile_rows=tile_rows, vmem_limit=vmem_limit)
            self.warmup_enabled = False          # disable_warmup()
        return _tqt_quantize(
            x, self.log_threshold, method=self.method, domain=self.domain,
            rows=rows, width=width, tile_rows=tile_rows, vmem_limit=vmem_limit)


# ----------------------------------------------------------------------------
# Demo / correctness check
# ----------------------------------------------------------------------------
def _ref_quant_np(x, log_t, domain, method):
    scale = np.float32(2.0 ** np.ceil(np.float32(log_t)) / domain)
    v = np.asarray(x, np.float32) / scale
    if method == 2:
        r = np.floor(v + 0.5)
    else:
        r = np.where(v >= 0, np.floor(v + 0.5), np.ceil(v - 0.5))
    return np.clip(r, -domain, domain - 1).astype(np.float32) * scale


def _ref_log_threshold_np(w_np):
    mean = np.mean(w_np + 1e-6, dtype=np.float32)
    std = np.std(w_np.astype(np.float32))
    return float(np.log2(np.abs(mean) + 3.0 * std))


if __name__ == "__main__":
    # 1) small conv weight (OIHW): warmup (3SD threshold) + std_round quantize.
    #    Ragged element count -> padded single-block path.
    w = jax.random.normal(jax.random.PRNGKey(0), (4, 4, 3, 3), jnp.float32) * 0.5
    w_mod = TQTQuantizerPallas(bitwidth=8, tensor_type="weight")
    wq = jax.block_until_ready(w_mod(w))
    w_np = np.asarray(w)
    assert abs(float(w_mod.log_threshold[0]) - _ref_log_threshold_np(w_np)) < 2e-4, \
        "warmup threshold mismatch"
    ref_w = _ref_quant_np(w_np, float(w_mod.log_threshold[0]), 128.0, 3)
    assert np.allclose(np.asarray(wq), ref_w, atol=1e-5), "weight quantization mismatch"

    # 2) small activation (NCHW): imported threshold (fp=5 -> log_threshold=2.0),
    #    half_up rounding, zero-copy single lane-dense block (width=2048).
    x = jax.random.normal(jax.random.PRNGKey(1), (2, 4, 16, 16), jnp.float32) * 2.0
    a_mod = TQTQuantizerPallas(bitwidth=8, tensor_type="act")
    a_mod.import_quant_info([8, 5])
    aq = jax.block_until_ready(a_mod(x))
    ref_a = _ref_quant_np(np.asarray(x), 2.0, 128.0, 2)
    assert np.allclose(np.asarray(aq), ref_a, atol=1e-5), "act quantization mismatch"

    # 3) zero-copy multi-block grid path (block-size overrides so the multi-step grid,
    #    accumulator init/finalize and parallel quantize grid are exercised at a small
    #    shape): width=8192, multi-step grid for both fused stats and quantize.
    w2 = jax.random.normal(jax.random.PRNGKey(2), (32, 64, 8, 8), jnp.float32) * 0.5
    w2_mod = TQTQuantizerPallas(bitwidth=8, tensor_type="weight",
                                plan_overrides={"single_block_bytes": 64 * 1024,
                                                "target_block_bytes": 256 * 1024})
    w2q = jax.block_until_ready(w2_mod(w2))
    w2_np = np.asarray(w2)
    assert abs(float(w2_mod.log_threshold[0]) - _ref_log_threshold_np(w2_np)) < 2e-4, \
        "warmup threshold mismatch (multi-block)"
    ref_w2 = _ref_quant_np(w2_np, float(w2_mod.log_threshold[0]), 128.0, 3)
    assert np.allclose(np.asarray(w2q), ref_w2, atol=1e-5), \
        "weight quantization mismatch (multi-block)"

    # 4) ragged multi-block path (prime-ish dims): padded, evenly split tiles.
    w3 = jax.random.normal(jax.random.PRNGKey(3), (3, 5, 35, 37), jnp.float32) * 0.5
    w3_mod = TQTQuantizerPallas(bitwidth=8, tensor_type="weight",
                                plan_overrides={"single_block_bytes": 4 * 1024,
                                                "target_block_bytes": 32 * 1024})
    w3q = jax.block_until_ready(w3_mod(w3))
    w3_np = np.asarray(w3)
    assert abs(float(w3_mod.log_threshold[0]) - _ref_log_threshold_np(w3_np)) < 2e-4, \
        "warmup threshold mismatch (ragged)"
    ref_w3 = _ref_quant_np(w3_np, float(w3_mod.log_threshold[0]), 128.0, 3)
    assert np.allclose(np.asarray(w3q), ref_w3, atol=1e-5), \
        "weight quantization mismatch (ragged)"

    print("KERNEL_OK")
</pallas_src>

<mosaic_0001>
module attributes {stable_mosaic.version = 11 : i64} {
  func.func @_stats_kernel(%arg0: i32, %arg1: memref<8x1024xf32, #tpu.memory_space<vmem>>, %arg2: memref<1x1xf32, #tpu.memory_space<vmem>>, %arg3: memref<1x1xf32, #tpu.memory_space<vmem>>, %arg4: memref<8x1024xf32, #tpu.memory_space<vmem>>, %arg5: memref<8x1024xf32, #tpu.memory_space<vmem>>) attributes {dimension_semantics = [#tpu.dimension_semantics<arbitrary>], iteration_bounds = array<i64: 1>, scalar_prefetch = 0 : i64, scratch_operands = 2 : i64, tpu.core_type = #tpu.core_type<tc>, window_params = [{transform_indices = @transform_0, window_bounds = array<i64: 8, 1024>}, {pipeline_mode = #tpu.pipeline_mode<synchronous>, transform_indices = @transform_1, window_bounds = array<i64: 1, 1>}, {pipeline_mode = #tpu.pipeline_mode<synchronous>, transform_indices = @transform_2, window_bounds = array<i64: 1, 1>}]} {
    %c0_i32 = arith.constant 0 : i32
    %0 = arith.cmpi eq, %arg0, %c0_i32 : i32
    %1 = arith.extui %0 : i1 to i32
    %c0_i32_0 = arith.constant 0 : i32
    %2 = arith.cmpi ne, %1, %c0_i32_0 : i32
    scf.if %2 {
      %cst = arith.constant 0.000000e+00 : f32
      %14 = vector.broadcast %cst : f32 to vector<8x1024xf32>
      %c0_12 = arith.constant 0 : index
      %c0_13 = arith.constant 0 : index
      %15 = vector.load %arg4[%c0_12, %c0_13] : memref<8x1024xf32, #tpu.memory_space<vmem>>, vector<8x1024xf32>
      tpu.vector_store %arg4[%c0_12, %c0_13], %14 {strides = array<i32>} : memref<8x1024xf32, #tpu.memory_space<vmem>>, vector<8x1024xf32>,
      %cst_14 = arith.constant 0.000000e+00 : f32
      %16 = vector.broadcast %cst_14 : f32 to vector<8x1024xf32>
      %c0_15 = arith.constant 0 : index
      %c0_16 = arith.constant 0 : index
      %17 = vector.load %arg5[%c0_15, %c0_16] : memref<8x1024xf32, #tpu.memory_space<vmem>>, vector<8x1024xf32>
      tpu.vector_store %arg5[%c0_15, %c0_16], %16 {strides = array<i32>} : memref<8x1024xf32, #tpu.memory_space<vmem>>, vector<8x1024xf32>,
    } else {
    }
    %c0 = arith.constant 0 : index
    %c0_1 = arith.constant 0 : index
    %3 = vector.load %arg1[%c0, %c0_1] : memref<8x1024xf32, #tpu.memory_space<vmem>>, vector<8x1024xf32>
    %c0_2 = arith.constant 0 : index
    %c0_3 = arith.constant 0 : index
    %4 = vector.load %arg4[%c0_2, %c0_3] : memref<8x1024xf32, #tpu.memory_space<vmem>>, vector<8x1024xf32>
    %5 = arith.addf %4, %3 : vector<8x1024xf32>
    %c0_4 = arith.constant 0 : index
    %c0_5 = arith.constant 0 : index
    %6 = vector.load %arg4[%c0_4, %c0_5] : memref<8x1024xf32, #tpu.memory_space<vmem>>, vector<8x1024xf32>
    tpu.vector_store %arg4[%c0_4, %c0_5], %5 {strides = array<i32>} : memref<8x1024xf32, #tpu.memory_space<vmem>>, vector<8x1024xf32>,
    %c0_6 = arith.constant 0 : index
    %c0_7 = arith.constant 0 : index
    %7 = vector.load %arg5[%c0_6, %c0_7] : memref<8x1024xf32, #tpu.memory_space<vmem>>, vector<8x1024xf32>
    %8 = arith.mulf %3, %3 : vector<8x1024xf32>
    %9 = arith.addf %7, %8 : vector<8x1024xf32>
    %c0_8 = arith.constant 0 : index
    %c0_9 = arith.constant 0 : index
    %10 = vector.load %arg5[%c0_8, %c0_9] : memref<8x1024xf32, #tpu.memory_space<vmem>>, vector<8x1024xf32>
    tpu.vector_store %arg5[%c0_8, %c0_9], %9 {strides = array<i32>} : memref<8x1024xf32, #tpu.memory_space<vmem>>, vector<8x1024xf32>,
    %c0_i32_10 = arith.constant 0 : i32
    %11 = arith.cmpi eq, %arg0, %c0_i32_10 : i32
    %12 = arith.extui %11 : i1 to i32
    %c0_i32_11 = arith.constant 0 : i32
    %13 = arith.cmpi ne, %12, %c0_i32_11 : i32
    scf.if %13 {
      %c0_12 = arith.constant 0 : index
      %c0_13 = arith.constant 0 : index
      %14 = vector.load %arg4[%c0_12, %c0_13] : memref<8x1024xf32, #tpu.memory_space<vmem>>, vector<8x1024xf32>
      %15 = vector.shape_cast %14 : vector<8x1024xf32> to vector<1x8x1024xf32>
      %cst = arith.constant dense<0.000000e+00> : vector<1xf32>
      %16 = vector.multi_reduction <add>, %15, %cst [1, 2] : vector<1x8x1024xf32> to vector<1xf32>
      %17 = vector.shape_cast %16 : vector<1xf32> to vector<1x1x1xf32>
      %18 = vector.extract %17[0, 0, 0] : f32 from vector<1x1x1xf32>
      %19 = vector.broadcast %18 : f32 to vector<1x1xf32>
      %c0_14 = arith.constant 0 : index
      %c0_15 = arith.constant 0 : index
      %20 = vector.load %arg2[%c0_14, %c0_15] : memref<1x1xf32, #tpu.memory_space<vmem>>, vector<1x1xf32>
      tpu.vector_store %arg2[%c0_14, %c0_15], %19 {strides = array<i32>} : memref<1x1xf32, #tpu.memory_space<vmem>>, vector<1x1xf32>,
      %c0_16 = arith.constant 0 : index
      %c0_17 = arith.constant 0 : index
      %21 = vector.load %arg5[%c0_16, %c0_17] : memref<8x1024xf32, #tpu.memory_space<vmem>>, vector<8x1024xf32>
      %22 = vector.shape_cast %21 : vector<8x1024xf32> to vector<1x8x1024xf32>
      %cst_18 = arith.constant dense<0.000000e+00> : vector<1xf32>
      %23 = vector.multi_reduction <add>, %22, %cst_18 [1, 2] : vector<1x8x1024xf32> to vector<1xf32>
      %24 = vector.shape_cast %23 : vector<1xf32> to vector<1x1x1xf32>
      %25 = vector.extract %24[0, 0, 0] : f32 from vector<1x1x1xf32>
      %26 = vector.broadcast %25 : f32 to vector<1x1xf32>
      %c0_19 = arith.constant 0 : index
      %c0_20 = arith.constant 0 : index
      %27 = vector.load %arg3[%c0_19, %c0_20] : memref<1x1xf32, #tpu.memory_space<vmem>>, vector<1x1xf32>
      tpu.vector_store %arg3[%c0_19, %c0_20], %26 {strides = array<i32>} : memref<1x1xf32, #tpu.memory_space<vmem>>, vector<1x1xf32>,
    } else {
    }
    return
  }
  func.func @transform_0(%arg0: i32) -> (i32, i32) {
    %c0_i32 = arith.constant 0 : i32
    %c0_i32_0 = arith.constant 0 : i32
    return %arg0, %c0_i32 : i32, i32
  }
  func.func @transform_1(%arg0: i32) -> (i32, i32) {
    %c0_i32 = arith.constant 0 : i32
    %c0_i32_0 = arith.constant 0 : i32
    %c0_i32_1 = arith.constant 0 : i32
    return %c0_i32, %c0_i32_0 : i32, i32
  }
  func.func @transform_2(%arg0: i32) -> (i32, i32) {
    %c0_i32 = arith.constant 0 : i32
    %c0_i32_0 = arith.constant 0 : i32
    %c0_i32_1 = arith.constant 0 : i32
    return %c0_i32, %c0_i32_0 : i32, i32
  }
}

</mosaic_0001>

<bundles_post_ra>
// kernel: _tqt_threshold_3sd.1
= control target key start
LH: loop header
LB: loop body
LE: loop exit
PB: predicated region body
PF: predicated region fallthrough
CT: control target
= control target key end

     0   :  { %8 = vsyncpa [#allocation5], 0  ;;  %s301_s0 = inlined_call_operand.vmem [shape: f32[8,1024], index: 0, kind: input, shape index: {}]   ;;  %s302_s1 = inlined_call_operand.hbm [shape: f32[1,1], index: 1, kind: output, shape index: {0}]   ;;  %s303_s2 = inlined_call_operand.hbm [shape: f32[1,1], index: 2, kind: output, shape index: {1}]  }
   0x1   :  { %v32_v0 = vld [vmem:[%s301_s0] sm:$0xff]  ;;  %v33_v1 = vld [vmem:[%s301_s0 + $0x8] sm:$0xff]  ;;  %v34_v2 = vld [vmem:[%s301_s0 + $0x10] sm:$0xff] }
   0x2   :  { %v73_v3 = vmul.f32 %v33_v1, %v33_v1  ;;  %v74_v4 = vmul.f32 %v34_v2, %v34_v2  ;;  %v107_v5 = vadd.f32 %v33_v1, %v32_v0  ;;  %v72_v6 = vmul.f32 %v32_v0, %v32_v0  ;;  %v35_v7 = vld [vmem:[%s301_s0 + $0x18] sm:$0xff] }
   0x3   :  { %9 = vsyncpa [#allocation7], 0  ;;  %v75_v8 = vmul.f32 %v35_v7, %v35_v7  ;;  %v36_v11 = vld [vmem:[%s301_s0 + $0x20] sm:$0xff]  ;;  %v37_v15 = vld [vmem:[%s301_s0 + $0x28] sm:$0xff]  ;;  %vm124_vm0 = vcmask 0   ;;  %s235_s27 = smov [#allocation6]  }
   0x4   :  { %v108_v9 = vadd.f32 %v107_v5, %v34_v2  ;;  %v134_v10 = vadd.f32 %v73_v3, %v72_v6  ;;  %v76_v12 = vmul.f32 %v36_v11, %v36_v11  ;;  %v77_v16 = vmul.f32 %v37_v15, %v37_v15  ;;  %v38_v19 = vld [vmem:[%s301_s0 + $0x30] sm:$0xff]  ;;  %v39_v23 = vld [vmem:[%s301_s0 + $0x38] sm:$0xff]  ;;  %s234_s0 = smov [#allocation4]   ;;  %s168_s28 = sshll.u32 %s235_s27, 4  ;;  %s169_s28 = int_to_ptr.vmem [resolvable:$true] %s168_s28 }
   0x5   :  { %v78_v20 = vmul.f32 %v38_v19, %v38_v19  ;;  %v79_v24 = vmul.f32 %v39_v23, %v39_v23  ;;  %s158_s25 = sshll.u32 %s234_s0, 4  ;;  %s159_s25 = int_to_ptr.vmem [resolvable:$true] %s158_s25 }
   0x6   :  { %v109_v13 = vadd.f32 %v108_v9, %v35_v7  ;;  %v135_v14 = vadd.f32 %v134_v10, %v74_v4  ;;  %s186_s29 = scalar_lea.vmem %s159_s25, 16  ;;  %s190_s30 = scalar_lea.vmem %s159_s25, 32 }
   0x7   :  { %p187_p0 = scmp.ne.s32.totalorder %s159_s25, %s186_s29  ;;  %p191_p1 = scmp.lt.s32.totalorder %s159_s25, %s159_s25 }
   0x8   :  { %v110_v17 = vadd.f32 %v109_v13, %v36_v11  ;;  %v136_v18 = vadd.f32 %v135_v14, %v75_v8  ;;  %p192_p2 = scmp.lt.s32.totalorder %s190_s30, %s186_s29 }
   0xa   :  { %v111_v21 = vadd.f32 %v110_v17, %v37_v15  ;;  %v137_v22 = vadd.f32 %v136_v18, %v76_v12  ;;  %p193_p3 = por %p192_p2, %p191_p1 }
   0xc   :  { %v112_v25 = vadd.f32 %v111_v21, %v38_v19  ;;  %v138_v26 = vadd.f32 %v137_v22, %v77_v16  ;;  %p194_p4 = pnand %p193_p3, %p187_p0 }
   0xe   :  { %v113_v27 = vadd.f32 %v112_v25, %v39_v23  ;;  %v139_v28 = vadd.f32 %v138_v26, %v78_v20 }
  0x10   :  { %114 = vadd.xlane.f32.xlu0 %v113_v27  ;;  %v140_v29 = vadd.f32 %v139_v28, %v79_v24 }
  0x14   :  { %141 = vadd.xlane.f32.xlu0 %v140_v29 }
  0x9d   :  { %v115_v30 = vpop.xlane.xlu0 %114 }
  0x9e   :  { %v116_v31 = vrot.slane %v115_v30, 4 }
  0xa0   :  { %v117_v32 = vadd.f32 %v116_v31, %v115_v30 }
  0xa1   :  { %v142_v33 = vpop.xlane.xlu0 %141 }
  0xa2   :  { %v118_v34 = vrot.slane %v117_v32, 2  ;;  %v143_v35 = vrot.slane %v142_v33, 4 }
  0xa4   :  { %v144_v36 = vadd.f32 %v143_v35, %v142_v33  ;;  %v119_v37 = vadd.f32 %v118_v34, %v117_v32 }
  0xa6   :  { %v145_v38 = vrot.slane %v144_v36, 2  ;;  %v120_v39 = vrot.slane %v119_v37, 1 }
  0xa8   :  { %v146_v40 = vadd.f32 %v145_v38, %v144_v36  ;;  %v121_v41 = vadd.f32 %v120_v39, %v119_v37 }
  0xaa   :  { %180 = vpush %v121_v41  ;;  %v147_v42 = vrot.slane %v146_v40, 1 }
  0xac   :  { %v148_v43 = vadd.f32 %v147_v42, %v146_v40 }
  0xae   :  { %182 = vpush %v148_v43 }
  0xdb   :  { %s181_s26 = spop %180 }
  0xdc   :  { %v123_v44 = vstv %s181_s26 }
  0xdd   :  { %125 = vst.msk [vmem:[#allocation4] sm:$0x1] %vm124_vm0, %v123_v44 }
  0xde   :  { %197 = shalt.err (!%p194_p4)
}
  0xdf   :  { %s198_s5 = scalar_lea.hbm %s302_s1, 16 }
  0xe0   :  { %p199_p5 = scmp.ne.s32.totalorder %s302_s1, %s198_s5  ;;  %p202_p6 = scmp.lt.u32.totalorder %s198_s5, %s302_s1 }
  0xe2   :  { %p204_p7 = pnand %p202_p6, %p199_p5 }
  0xe4   :  { %207 = shalt.err (!%p204_p7)
}
  0xe5   :  { %161 = dma.vmem_to_hbm [thread:$0]  %s159_s25, 16, %s302_s1, [#allocation5]  }
  0xe6   :  { %s183_s12 = spop %182  ;;  %s208_s13 = scalar_lea.vmem %s169_s28, 16 }
  0xe7   :  { %v150_v45 = vstv %s183_s12  ;;  %p209_p8 = scmp.ne.s32.totalorder %s169_s28, %s208_s13  ;;  %s212_s14 = scalar_lea.vmem %s169_s28, 32 }
  0xe8   :  { %151 = vst.msk [vmem:[#allocation6] sm:$0x1] %vm124_vm0, %v150_v45  ;;  %p213_p9 = scmp.lt.s32.totalorder %s169_s28, %s169_s28  ;;  %p214_p10 = scmp.lt.s32.totalorder %s212_s14, %s208_s13 }
  0xea   :  { %p215_p11 = por %p214_p10, %p213_p9 }
  0xec   :  { %p216_p12 = pnand %p215_p11, %p209_p8 }
  0xee   :  { %219 = shalt.err (!%p216_p12)
}
  0xef   :  { %s220_s17 = scalar_lea.hbm %s303_s2, 16 }
  0xf0   :  { %p221_p13 = scmp.ne.s32.totalorder %s303_s2, %s220_s17  ;;  %p224_p0 = scmp.lt.u32.totalorder %s220_s17, %s303_s2 }
  0xf2   :  { %p226_p1 = pnand %p224_p0, %p221_p13 }
  0xf4   :  { %229 = shalt.err (!%p226_p1)
}
  0xf5   :  { %171 = dma.vmem_to_hbm [thread:$0]  %s169_s28, 16, %s303_s2, [#allocation7]  }
  0xf6   :  { %230 = dma.done.wait [#allocation5], 16  }
  0xf7   :  { %231 = vsyncadd [#allocation5], 4294967280 }
  0xf8   :  { %232 = dma.done.wait [#allocation7], 16  }
  0xf9   :  { %233 = vsyncadd [#allocation7], 4294967280 }
  0xfa   :  { %178 = vsyncpa [#allocation5], 1 }
  0xfb   :  { %179 = vsyncpa [#allocation7], 1 }

</bundles_post_ra>
